<compile_context>
chip_gen: v7x
topology: tpu7x:2x2x1
jax: 0.10.0
libtpu: 0.0.40
codegen_flags: <defaults>
</compile_context>

<pallas_src>
import jax
import jax.numpy as jnp
from jax.experimental import pallas as pl
from jax.experimental.pallas import tpu as pltpu

INPUT_DIM = 28 * 28   # 784
OUTPUT_DIM = 10


def linear_kernel(x_ref, w_ref, b_ref, o_ref):
    # x_ref: (TB, 784)  w_ref: (784, 10)  b_ref: (1, 10)  o_ref: (TB, 10)
    acc = jnp.dot(x_ref[...], w_ref[...], preferred_element_type=jnp.float32)
    # Bias add in f32 on the VPU; (1,10) broadcasts against (TB,10).
    o_ref[...] = (acc + b_ref[...]).astype(o_ref.dtype)


def prepare_linear_params(weight, bias):
    """One-time parameter prep, hoisted out of the per-call path.
    weight: (10, 784) -> (784, 10); bias: (10,) -> (1, 10)."""
    return weight.T, bias.reshape(1, -1)


def _round_up(x, m):
    return ((x + m - 1) // m) * m


def linear_forward(x, w_t, b2d, *, block_b=1024):
    """x: (B, 784) f32, w_t: (784, 10) f32, b2d: (1, 10) f32 -> (B, 10) f32."""
    B, D = x.shape
    O = w_t.shape[1]

    # Batch tile: multiple of 8 (sublane rule), no larger than needed.
    tb = min(_round_up(block_b, 8), _round_up(B, 8))
    b_pad = _round_up(B, tb)
    if b_pad != B:
        x = jnp.pad(x, ((0, b_pad - B), (0, 0)))

    grid = (b_pad // tb,)

    out = pl.pallas_call(
        linear_kernel,
        out_shape=jax.ShapeDtypeStruct((b_pad, O), jnp.float32),
        grid=grid,
        in_specs=[
            # x: one batch tile per grid step (auto double-buffered pipeline).
            pl.BlockSpec((tb, D), lambda i: (i, 0)),
            # weight / bias: constant index_map -> VMEM-resident across steps.
            pl.BlockSpec((D, O), lambda i: (0, 0)),
            pl.BlockSpec((1, O), lambda i: (0, 0)),
        ],
        out_specs=pl.BlockSpec((tb, O), lambda i: (i, 0)),
        compiler_params=pltpu.CompilerParams(
            dimension_semantics=("parallel",),
        ),
        cost_estimate=pl.CostEstimate(
            flops=2 * b_pad * D * O,
            transcendentals=0,
            bytes_accessed=b_pad * D * 4 + D * O * 4 + b_pad * O * 4,
        ),
    )(x, w_t, b2d)

    if b_pad != B:
        out = out[:B]
    return out


if __name__ == "__main__":
    key = jax.random.PRNGKey(0)
    kx, kw, kb = jax.random.split(key, 3)

    # Small batch; deliberately NOT a multiple of 8 to exercise the
    # pad-to-tile / slice-back path.
    B = 13

    # Deterministic parameter init (PyTorch-style uniform bound 1/sqrt(fan_in)).
    bound = 1.0 / (INPUT_DIM ** 0.5)
    weight = jax.random.uniform(kw, (OUTPUT_DIM, INPUT_DIM),
                                minval=-bound, maxval=bound, dtype=jnp.float32)
    bias = jax.random.uniform(kb, (OUTPUT_DIM,),
                              minval=-bound, maxval=bound, dtype=jnp.float32)
    x = jax.random.normal(kx, (B, INPUT_DIM), dtype=jnp.float32)

    # One-time parameter prep (transpose / reshape hoisted out of forward).
    w_t, b2d = prepare_linear_params(weight, bias)

    out = linear_forward(x, w_t, b2d)
    out = jax.block_until_ready(out)

    # Correctness check against plain-JAX reference.
    ref = x @ weight.T + bias
    assert out.shape == (B, OUTPUT_DIM)
    assert jnp.allclose(out, ref, atol=1e-4, rtol=1e-4), "mismatch vs reference"

    print("KERNEL_OK")
</pallas_src>

<mosaic_0001>
module attributes {stable_mosaic.version = 11 : i64} {
  func.func @linear_kernel(%arg0: i32, %arg1: memref<16x784xf32, #tpu.memory_space<vmem>>, %arg2: memref<784x10xf32, #tpu.memory_space<vmem>>, %arg3: memref<1x10xf32, #tpu.memory_space<vmem>>, %arg4: memref<16x10xf32, #tpu.memory_space<vmem>>) attributes {dimension_semantics = [#tpu.dimension_semantics<parallel>], iteration_bounds = array<i64: 1>, scalar_prefetch = 0 : i64, scratch_operands = 0 : i64, tpu.core_type = #tpu.core_type<tc>, window_params = [{transform_indices = @transform_0, window_bounds = array<i64: 16, 784>}, {pipeline_mode = #tpu.pipeline_mode<synchronous>, transform_indices = @transform_1, window_bounds = array<i64: 784, 10>}, {pipeline_mode = #tpu.pipeline_mode<synchronous>, transform_indices = @transform_2, window_bounds = array<i64: 1, 10>}, {transform_indices = @transform_3, window_bounds = array<i64: 16, 10>}]} {
    %c0 = arith.constant 0 : index
    %c0_0 = arith.constant 0 : index
    %0 = vector.load %arg1[%c0, %c0_0] : memref<16x784xf32, #tpu.memory_space<vmem>>, vector<16x784xf32>
    %c0_1 = arith.constant 0 : index
    %c0_2 = arith.constant 0 : index
    %1 = vector.load %arg2[%c0_1, %c0_2] : memref<784x10xf32, #tpu.memory_space<vmem>>, vector<784x10xf32>
    %cst = arith.constant dense<0.000000e+00> : vector<16x10xf32>
    %2 = tpu.matmul %0, %1, %cst {dimension_numbers = #tpu.dot_dimension_numbers<[1], [0], [0], [1], [0, 0, 1, 1], [], []>} : vector<16x784xf32>, vector<784x10xf32>, vector<16x10xf32> -> vector<16x10xf32>
    %c0_3 = arith.constant 0 : index
    %c0_4 = arith.constant 0 : index
    %3 = vector.load %arg3[%c0_3, %c0_4] : memref<1x10xf32, #tpu.memory_space<vmem>>, vector<1x10xf32>
    %4 = vector.broadcast %3 : vector<1x10xf32> to vector<16x10xf32>
    %5 = arith.addf %2, %4 : vector<16x10xf32>
    %c0_5 = arith.constant 0 : index
    %c0_6 = arith.constant 0 : index
    %6 = vector.load %arg4[%c0_5, %c0_6] : memref<16x10xf32, #tpu.memory_space<vmem>>, vector<16x10xf32>
    tpu.vector_store %arg4[%c0_5, %c0_6], %5 {strides = array<i32>} : memref<16x10xf32, #tpu.memory_space<vmem>>, vector<16x10xf32>,
    return
  }
  func.func @transform_0(%arg0: i32) -> (i32, i32) {
    %c0_i32 = arith.constant 0 : i32
    %c0_i32_0 = arith.constant 0 : i32
    return %arg0, %c0_i32 : i32, i32
  }
  func.func @transform_1(%arg0: i32) -> (i32, i32) {
    %c0_i32 = arith.constant 0 : i32
    %c0_i32_0 = arith.constant 0 : i32
    %c0_i32_1 = arith.constant 0 : i32
    return %c0_i32, %c0_i32_0 : i32, i32
  }
  func.func @transform_2(%arg0: i32) -> (i32, i32) {
    %c0_i32 = arith.constant 0 : i32
    %c0_i32_0 = arith.constant 0 : i32
    %c0_i32_1 = arith.constant 0 : i32
    return %c0_i32, %c0_i32_0 : i32, i32
  }
  func.func @transform_3(%arg0: i32) -> (i32, i32) {
    %c0_i32 = arith.constant 0 : i32
    %c0_i32_0 = arith.constant 0 : i32
    return %arg0, %c0_i32 : i32, i32
  }
}

</mosaic_0001>

<bundles_post_ra>
// kernel: tpu_custom_call.1
= control target key start
LH: loop header
LB: loop body
LE: loop exit
PB: predicated region body
PF: predicated region fallthrough
CT: control target
= control target key end

     0   :  { %s1089_s0 = inlined_call_operand.vmem [shape: f32[16,784], index: 0, kind: input, shape index: {}]   ;;  %s1090_s1 = inlined_call_operand.vmem [shape: f32[784,10], index: 1, kind: input, shape index: {}]   ;;  %s1091_s2 = inlined_call_operand.vmem [shape: f32[1,10], index: 2, kind: input, shape index: {}]   ;;  %s1092_s3 = inlined_call_operand.hbm [shape: f32[16,10], index: 3, kind: output, shape index: {}]  }
   0x1   :  { %v45_v0 = vld [vmem:[%s1090_s1 + $0x80] sm:$0xff]  ;;  %v46_v1 = vld [vmem:[%s1090_s1 + $0x88] sm:$0xff]  ;;  %v47_v11 = vld [vmem:[%s1090_s1 + $0x90] sm:$0xff] }
   0x2   :  { %v29_v2 = vld [vmem:[%s1090_s1] sm:$0xff]  ;;  %v588_v3 = vpack.c.bf16 %v46_v1, %v45_v0  ;;  %v30_v4 = vld [vmem:[%s1090_s1 + $0x8] sm:$0xff]  ;;  %v48_v13 = vld [vmem:[%s1090_s1 + $0x98] sm:$0xff] }
   0x3   :  { %v77_v5 = vld [vmem:[%s1090_s1 + $0x180] sm:$0xff]  ;;  %v78_v6 = vld [vmem:[%s1090_s1 + $0x188] sm:$0xff]  ;;  %v590_v7 = vpack.c.bf16 %v30_v4, %v29_v2  ;;  %v31_v14 = vld [vmem:[%s1090_s1 + $0x10] sm:$0xff]  ;;  %v592_v16 = vpack.c.bf16 %v48_v13, %v47_v11 }
   0x4   :  { %v620_v8 = vpack.c.bf16 %v78_v6, %v77_v5  ;;  %v61_v9 = vld [vmem:[%s1090_s1 + $0x100] sm:$0xff]  ;;  %v62_v10 = vld [vmem:[%s1090_s1 + $0x108] sm:$0xff]  ;;  %589 = vmatprep.subr.bf16.mxu0 %v588_v3  ;;  %v32_v15 = vld [vmem:[%s1090_s1 + $0x18] sm:$0xff] }
   0x5   :  { %v622_v12 = vpack.c.bf16 %v62_v10, %v61_v9  ;;  %591 = vmatpush3.bf16.msra.mxu0 %v590_v7  ;;  %v594_v17 = vpack.c.bf16 %v32_v15, %v31_v14  ;;  %v79_v18 = vld [vmem:[%s1090_s1 + $0x190] sm:$0xff]  ;;  %v80_v19 = vld [vmem:[%s1090_s1 + $0x198] sm:$0xff]  ;;  %v49_v23 = vld [vmem:[%s1090_s1 + $0xa0] sm:$0xff] }
   0x6   :  { %621 = vmatprep.subr.bf16.mxu1 %v620_v8  ;;  %v63_v20 = vld [vmem:[%s1090_s1 + $0x110] sm:$0xff]  ;;  %v624_v21 = vpack.c.bf16 %v80_v19, %v79_v18  ;;  %v64_v22 = vld [vmem:[%s1090_s1 + $0x118] sm:$0xff]  ;;  %v50_v24 = vld [vmem:[%s1090_s1 + $0xa8] sm:$0xff]  ;;  %593 = vmatprep.subr.bf16.mxu0 %v592_v16 }
   0x7   :  { %623 = vmatpush3.bf16.msra.mxu1 %v622_v12  ;;  %v626_v25 = vpack.c.bf16 %v64_v22, %v63_v20  ;;  %v596_v26 = vpack.c.bf16 %v50_v24, %v49_v23  ;;  %v33_v27 = vld [vmem:[%s1090_s1 + $0x20] sm:$0xff]  ;;  %v34_v28 = vld [vmem:[%s1090_s1 + $0x28] sm:$0xff]  ;;  %v51_v35 = vld [vmem:[%s1090_s1 + $0xb0] sm:$0xff] }
   0x8   :  { %v81_v29 = vld [vmem:[%s1090_s1 + $0x1a0] sm:$0xff]  ;;  %625 = vmatprep.subr.bf16.mxu1 %v624_v21  ;;  %v82_v30 = vld [vmem:[%s1090_s1 + $0x1a8] sm:$0xff]  ;;  %v598_v33 = vpack.c.bf16 %v34_v28, %v33_v27  ;;  %v52_v36 = vld [vmem:[%s1090_s1 + $0xb8] sm:$0xff] }
   0x9   :  { %v65_v31 = vld [vmem:[%s1090_s1 + $0x120] sm:$0xff]  ;;  %v66_v32 = vld [vmem:[%s1090_s1 + $0x128] sm:$0xff]  ;;  %595 = vmatpush3.bf16.msra.mxu0 %v594_v17  ;;  %v628_v34 = vpack.c.bf16 %v82_v30, %v81_v29  ;;  %v35_v37 = vld [vmem:[%s1090_s1 + $0x30] sm:$0xff]  ;;  %v600_v39 = vpack.c.bf16 %v52_v36, %v51_v35 }
   0xa   :  { %597 = vmatprep.subr.bf16.mxu0 %v596_v26  ;;  %v630_v38 = vpack.c.bf16 %v66_v32, %v65_v31  ;;  %v36_v40 = vld [vmem:[%s1090_s1 + $0x38] sm:$0xff]  ;;  %v83_v41 = vld [vmem:[%s1090_s1 + $0x1b0] sm:$0xff]  ;;  %v53_v46 = vld [vmem:[%s1090_s1 + $0xc0] sm:$0xff] }
   0xb   :  { %627 = vmatpush3.bf16.msra.mxu1 %v626_v25  ;;  %v84_v42 = vld [vmem:[%s1090_s1 + $0x1b8] sm:$0xff]  ;;  %v67_v44 = vld [vmem:[%s1090_s1 + $0x130] sm:$0xff]  ;;  %v54_v47 = vld [vmem:[%s1090_s1 + $0xc8] sm:$0xff]  ;;  %v602_v48 = vpack.c.bf16 %v36_v40, %v35_v37 }
   0xc   :  { %629 = vmatprep.subr.bf16.mxu1 %v628_v34  ;;  %v632_v43 = vpack.c.bf16 %v84_v42, %v83_v41  ;;  %v68_v45 = vld [vmem:[%s1090_s1 + $0x138] sm:$0xff]  ;;  %v85_v49 = vld [vmem:[%s1090_s1 + $0x1c0] sm:$0xff]  ;;  %v86_v50 = vld [vmem:[%s1090_s1 + $0x1c8] sm:$0xff]  ;;  %v604_v52 = vpack.c.bf16 %v54_v47, %v53_v46 }
   0xd   :  { %599 = vmatpush3.bf16.msra.mxu0 %v598_v33  ;;  %v634_v51 = vpack.c.bf16 %v68_v45, %v67_v44  ;;  %v37_v53 = vld [vmem:[%s1090_s1 + $0x40] sm:$0xff]  ;;  %v38_v54 = vld [vmem:[%s1090_s1 + $0x48] sm:$0xff]  ;;  %v636_v56 = vpack.c.bf16 %v86_v50, %v85_v49  ;;  %v55_v58 = vld [vmem:[%s1090_s1 + $0xd0] sm:$0xff] }
   0xe   :  { %601 = vmatprep.subr.bf16.mxu0 %v600_v39  ;;  %v69_v55 = vld [vmem:[%s1090_s1 + $0x140] sm:$0xff]  ;;  %v70_v57 = vld [vmem:[%s1090_s1 + $0x148] sm:$0xff]  ;;  %v56_v59 = vld [vmem:[%s1090_s1 + $0xd8] sm:$0xff]  ;;  %v606_v62 = vpack.c.bf16 %v38_v54, %v37_v53 }
   0xf   :  { %631 = vmatpush3.bf16.msra.mxu1 %v630_v38  ;;  %v87_v60 = vld [vmem:[%s1090_s1 + $0x1d0] sm:$0xff]  ;;  %v88_v61 = vld [vmem:[%s1090_s1 + $0x1d8] sm:$0xff]  ;;  %v638_v63 = vpack.c.bf16 %v70_v57, %v69_v55  ;;  %v608_v0 = vpack.c.bf16 %v56_v59, %v55_v58  ;;  %v57_v6 = vld [vmem:[%s1090_s1 + $0xe0] sm:$0xff] }
  0x10   :  { %633 = vmatprep.subr.bf16.mxu1 %v632_v43  ;;  %v39_v1 = vld [vmem:[%s1090_s1 + $0x50] sm:$0xff]  ;;  %v40_v2 = vld [vmem:[%s1090_s1 + $0x58] sm:$0xff]  ;;  %v640_v4 = vpack.c.bf16 %v88_v61, %v87_v60  ;;  %v58_v7 = vld [vmem:[%s1090_s1 + $0xe8] sm:$0xff] }
  0x11   :  { %603 = vmatpush3.bf16.msra.mxu0 %v602_v48  ;;  %v71_v3 = vld [vmem:[%s1090_s1 + $0x150] sm:$0xff]  ;;  %v72_v5 = vld [vmem:[%s1090_s1 + $0x158] sm:$0xff]  ;;  %v89_v8 = vld [vmem:[%s1090_s1 + $0x1e0] sm:$0xff]  ;;  %v610_v10 = vpack.c.bf16 %v40_v2, %v39_v1  ;;  %v612_v14 = vpack.c.bf16 %v58_v7, %v57_v6 }
  0x12   :  { %605 = vmatprep.subr.bf16.mxu0 %v604_v52  ;;  %v90_v9 = vld [vmem:[%s1090_s1 + $0x1e8] sm:$0xff]  ;;  %v41_v11 = vld [vmem:[%s1090_s1 + $0x60] sm:$0xff]  ;;  %v642_v13 = vpack.c.bf16 %v72_v5, %v71_v3  ;;  %v59_v19 = vld [vmem:[%s1090_s1 + $0xf0] sm:$0xff] }
  0x13   :  { %635 = vmatpush3.bf16.msra.mxu1 %v634_v51  ;;  %v16_v12 = vld [vmem:[%s1089_s0 + $0x8] sm:$0xff]  ;;  %v73_v16 = vld [vmem:[%s1090_s1 + $0x160] sm:$0xff]  ;;  %v644_v18 = vpack.c.bf16 %v90_v9, %v89_v8  ;;  %v60_v20 = vld [vmem:[%s1090_s1 + $0xf8] sm:$0xff] }
  0x14   :  { %637 = vmatprep.subr.bf16.mxu1 %v636_v56  ;;  %v42_v15 = vld [vmem:[%s1090_s1 + $0x68] sm:$0xff]  ;;  %205 = vmatprep.mubr.f32.mxu0 %v16_v12  ;;  %v18_v21 = vld [vmem:[%s1089_s0 + $0x18] sm:$0xff]  ;;  %v91_v22 = vld [vmem:[%s1090_s1 + $0x1f0] sm:$0xff]  ;;  %v616_v26 = vpack.c.bf16 %v60_v20, %v59_v19 }
  0x15   :  { %607 = vmatpush3.bf16.msra.mxu0 %v606_v62  ;;  %v74_v17 = vld [vmem:[%s1090_s1 + $0x168] sm:$0xff]  ;;  %v92_v23 = vld [vmem:[%s1090_s1 + $0x1f8] sm:$0xff]  ;;  %280 = vmatprep.mubr.f32.mxu1 %v18_v21  ;;  %v614_v24 = vpack.c.bf16 %v42_v15, %v41_v11  ;;  %v43_v27 = vld [vmem:[%s1090_s1 + $0x70] sm:$0xff] }
  0x16   :  { %609 = vmatprep.subr.bf16.mxu0 %v608_v0  ;;  %v646_v25 = vpack.c.bf16 %v74_v17, %v73_v16  ;;  %v44_v28 = vld [vmem:[%s1090_s1 + $0x78] sm:$0xff]  ;;  %v75_v29 = vld [vmem:[%s1090_s1 + $0x170] sm:$0xff]  ;;  %v648_v30 = vpack.c.bf16 %v92_v23, %v91_v22  ;;  %v109_v32 = vld [vmem:[%s1090_s1 + $0x280] sm:$0xff] }
  0x17   :  { %639 = vmatpush3.bf16.msra.mxu1 %v638_v63  ;;  %v76_v31 = vld [vmem:[%s1090_s1 + $0x178] sm:$0xff]  ;;  %v110_v33 = vld [vmem:[%s1090_s1 + $0x288] sm:$0xff]  ;;  %v618_v34 = vpack.c.bf16 %v44_v28, %v43_v27  ;;  %v93_v37 = vld [vmem:[%s1090_s1 + $0x200] sm:$0xff] }
  0x18   :  { %641 = vmatprep.subr.bf16.mxu1 %v640_v4  ;;  %v650_v35 = vpack.c.bf16 %v76_v31, %v75_v29  ;;  %v652_v36 = vpack.c.bf16 %v110_v33, %v109_v32  ;;  %v94_v38 = vld [vmem:[%s1090_s1 + $0x208] sm:$0xff]  ;;  %v111_v39 = vld [vmem:[%s1090_s1 + $0x290] sm:$0xff]  ;;  %v112_v40 = vld [vmem:[%s1090_s1 + $0x298] sm:$0xff] }
  0x19   :  { %611 = vmatpush3.bf16.msra.mxu0 %v610_v10  ;;  %v15_v41 = vld [vmem:[%s1089_s0] sm:$0xff]  ;;  %v654_v42 = vpack.c.bf16 %v94_v38, %v93_v37  ;;  %v17_v43 = vld [vmem:[%s1089_s0 + $0x10] sm:$0xff]  ;;  %v656_v44 = vpack.c.bf16 %v112_v40, %v111_v39  ;;  %v96_v46 = vld [vmem:[%s1090_s1 + $0x218] sm:$0xff] }
  0x1a   :  { %613 = vmatprep.subr.bf16.mxu0 %v612_v14  ;;  %v95_v45 = vld [vmem:[%s1090_s1 + $0x210] sm:$0xff]  ;;  %v113_v47 = vld [vmem:[%s1090_s1 + $0x2a0] sm:$0xff]  ;;  %v114_v48 = vld [vmem:[%s1090_s1 + $0x2a8] sm:$0xff] }
  0x1b   :  { %643 = vmatpush3.bf16.msra.mxu1 %v642_v13  ;;  %v23_v49 = vld [vmem:[%s1089_s0 + $0x40] sm:$0xff]  ;;  %v25_v50 = vld [vmem:[%s1089_s0 + $0x50] sm:$0xff]  ;;  %v126_v52 = vld [vmem:[%s1090_s1 + $0x308] sm:$0xff]  ;;  %v658_v53 = vpack.c.bf16 %v96_v46, %v95_v45  ;;  %v660_v57 = vpack.c.bf16 %v114_v48, %v113_v47 }
  0x1c   :  { %645 = vmatprep.subr.bf16.mxu1 %v644_v18  ;;  %v125_v51 = vld [vmem:[%s1090_s1 + $0x300] sm:$0xff]  ;;  %v22_v55 = vld [vmem:[%s1089_s0 + $0x38] sm:$0xff]  ;;  %v98_v58 = vld [vmem:[%s1090_s1 + $0x228] sm:$0xff] }
  0x1d   :  { %615 = vmatpush3.bf16.msra.mxu0 %v614_v24  ;;  %v97_v54 = vld [vmem:[%s1090_s1 + $0x220] sm:$0xff]  ;;  %v684_v56 = vpack.c.bf16 %v126_v52, %v125_v51  ;;  %v24_v59 = vld [vmem:[%s1089_s0 + $0x48] sm:$0xff] }
  0x1e   :  { %617 = vmatprep.subr.bf16.mxu0 %v616_v26 }
  0x1f   :  { %647 = vmatpush3.bf16.msra.mxu1 %v646_v25 }
  0x20   :  { %649 = vmatprep.subr.bf16.mxu1 %v648_v30 }
  0x21   :  { %619 = vmatpush3.bf16.msra.mxu0 %v618_v34 }
  0x22   :  { %653 = vmatprep.subr.bf16.mxu0 %v652_v36 }
  0x23   :  { %651 = vmatpush3.bf16.msra.mxu1 %v650_v35 }
  0x24   :  { %206 = vmatmul.mubr.f32.vlgmr.msra.gmra.mrb[0].mxu0 %v15_v41 }
  0x25   :  { %655 = vmatpush3.bf16.msra.mxu0 %v654_v42  ;;  %210 = vmatprep.mubr.f32.mxu0 %v23_v49 }
  0x26   :  { %281 = vmatmul.mubr.f32.vlgmr.msra.gmra.mrb[0].mxu1 %v17_v43  ;;  %657 = vmatprep.subr.bf16.mxu0 %v656_v44 }
  0x27   :  { %8 = vsyncpa [#allocation3], 0  ;;  %v115_v60 = vld [vmem:[%s1090_s1 + $0x2b0] sm:$0xff]  ;;  %v116_v61 = vld [vmem:[%s1090_s1 + $0x2b8] sm:$0xff]  ;;  %285 = vmatprep.mubr.f32.mxu1 %v25_v50  ;;  %685 = vmatprep.subr.bf16.mxu1 %v684_v56  ;;  %vm134_vm0 = vcmask 130048   ;;  %v662_v0 = vpack.c.bf16 %v98_v58, %v97_v54  ;;  %vm441_vm1 = vcmask 80896  }
  0x28   :  { %v20_v62 = vld [vmem:[%s1089_s0 + $0x28] sm:$0xff]  ;;  %211 = vmatmul.mubr.f32.gmra.mrb[2].mxu0 %v22_v55  ;;  %687 = vmatpush3.bf16.msra.mxu1 %v684_v56  ;;  %v21_v63 = vld [vmem:[%s1089_s0 + $0x30] sm:$0xff]  ;;  %v664_v1 = vpack.c.bf16 %v116_v61, %v115_v60  ;;  %v100_v3 = vld [vmem:[%s1090_s1 + $0x238] sm:$0xff] }
  0x29   :  { %659 = vmatpush3.bf16.msra.mxu0 %v658_v53  ;;  %v99_v2 = vld [vmem:[%s1090_s1 + $0x230] sm:$0xff]  ;;  %355 = vmatprep.mubr.f32.mxu0 %v20_v62  ;;  %v28_v4 = vld [vmem:[%s1089_s0 + $0x68] sm:$0xff]  ;;  %v117_v5 = vld [vmem:[%s1090_s1 + $0x2c0] sm:$0xff] }
  0x2a   :  { %286 = vmatmul.mubr.f32.gmra.mrb[2].mxu1 %v24_v59  ;;  %661 = vmatprep.subr.bf16.mxu0 %v660_v57  ;;  %v118_v6 = vld [vmem:[%s1090_s1 + $0x2c8] sm:$0xff]  ;;  %v666_v7 = vpack.c.bf16 %v100_v3, %v99_v2  ;;  %v101_v9 = vld [vmem:[%s1090_s1 + $0x240] sm:$0xff]  ;;  %v119_v11 = vld [vmem:[%s1090_s1 + $0x2d0] sm:$0xff] }
  0x2b   :  { %585 = vmatprep.mubr.msk.f32.mxu1 %vm134_vm0, %v21_v63  ;;  %v668_v8 = vpack.c.bf16 %v118_v6, %v117_v5  ;;  %v102_v10 = vld [vmem:[%s1090_s1 + $0x248] sm:$0xff]  ;;  %v120_v12 = vld [vmem:[%s1090_s1 + $0x2d8] sm:$0xff]  ;;  %v103_v15 = vld [vmem:[%s1090_s1 + $0x250] sm:$0xff] }
  0x2c   :  { %v670_v13 = vpack.c.bf16 %v102_v10, %v101_v9  ;;  %v672_v14 = vpack.c.bf16 %v120_v12, %v119_v11  ;;  %v104_v16 = vld [vmem:[%s1090_s1 + $0x258] sm:$0xff]  ;;  %v121_v17 = vld [vmem:[%s1090_s1 + $0x2e0] sm:$0xff]  ;;  %v122_v18 = vld [vmem:[%s1090_s1 + $0x2e8] sm:$0xff] }
  0x2d   :  { %663 = vmatpush3.bf16.msra.mxu0 %v662_v0  ;;  %v674_v19 = vpack.c.bf16 %v104_v16, %v103_v15  ;;  %v676_v20 = vpack.c.bf16 %v122_v18, %v121_v17  ;;  %v105_v21 = vld [vmem:[%s1090_s1 + $0x260] sm:$0xff]  ;;  %v106_v22 = vld [vmem:[%s1090_s1 + $0x268] sm:$0xff]  ;;  %v123_v23 = vld [vmem:[%s1090_s1 + $0x2f0] sm:$0xff] }
  0x2e   :  { %586 = vmatmul.mubr.msk.f32.vlgmr.msra.gmra.mrb[4].mxu1 %vm134_vm0, %v28_v4  ;;  %665 = vmatprep.subr.bf16.mxu0 %v664_v1  ;;  %v124_v24 = vld [vmem:[%s1090_s1 + $0x2f8] sm:$0xff]  ;;  %v678_v25 = vpack.c.bf16 %v106_v22, %v105_v21  ;;  %v107_v27 = vld [vmem:[%s1090_s1 + $0x270] sm:$0xff]  ;;  %v19_v30 = vld [vmem:[%s1089_s0 + $0x20] sm:$0xff] }
  0x2f   :  { %v680_v26 = vpack.c.bf16 %v124_v24, %v123_v23  ;;  %v108_v28 = vld [vmem:[%s1090_s1 + $0x278] sm:$0xff]  ;;  %v27_v31 = vld [vmem:[%s1089_s0 + $0x60] sm:$0xff] }
  0x30   :  { %v682_v29 = vpack.c.bf16 %v108_v28, %v107_v27  ;;  %v26_v32 = vld [vmem:[%s1089_s0 + $0x58] sm:$0xff]  ;;  %v460_v34 = vld [vmem:[%s1091_s2] ss:$0 sm:$0xff]  ;;  %s715_s0 = smov [#allocation2]  }
  0x31   :  { %667 = vmatpush3.bf16.msra.mxu0 %v666_v7  ;;  %s449_s2 = sshll.u32 %s715_s0, 4  ;;  %s450_s2 = int_to_ptr.vmem [resolvable:$true] %s449_s2 }
  0x32   :  { %669 = vmatprep.subr.bf16.mxu0 %v668_v8  ;;  %s691_s21 = scalar_lea.vmem %s450_s2, 256  ;;  %p696_p1 = scmp.lt.s32.totalorder %s450_s2, %s450_s2 }
  0x33   :  { %p692_p0 = scmp.ne.s32.totalorder %s450_s2, %s691_s21  ;;  %p697_p2 = scmp.lt.s32.totalorder %s691_s21, %s691_s21 }
  0x35   :  { %671 = vmatpush3.bf16.msra.mxu0 %v670_v13  ;;  %p698_p3 = por %p697_p2, %p696_p1 }
  0x36   :  { %673 = vmatprep.subr.bf16.mxu0 %v672_v14 }
  0x37   :  { %p699_p4 = pnand %p698_p3, %p692_p0 }
  0x39   :  { %675 = vmatpush3.bf16.msra.mxu0 %v674_v19 }
  0x3a   :  { %677 = vmatprep.subr.bf16.mxu0 %v676_v20 }
  0x3d   :  { %679 = vmatpush3.bf16.msra.mxu0 %v678_v25 }
  0x3e   :  { %681 = vmatprep.subr.bf16.mxu0 %v680_v26 }
  0x41   :  { %683 = vmatpush3.bf16.msra.mxu0 %v682_v29 }
  0x44   :  { %356 = vmatmul.mubr.f32.vlgmr.msra.gmra.mrb[4].mxu0 %v19_v30 }
  0x45   :  { %360 = vmatprep.mubr.f32.mxu0 %v27_v31 }
  0x48   :  { %361 = vmatmul.mubr.f32.gmra.mrb[6].mxu0 %v26_v32 }
  0xf7   :  { %v495_v33 = vpop.f32.mrb[0].mxu0 }
  0xf8   :  { %v496_v35 = vpop.f32.mrb[1].mxu0 }
  0xf9   :  { %v533_v36 = vpop.f32.mrb[0].mxu1  ;;  %v497_v37 = vadd.f32 %v496_v35, %v495_v33 }
  0xfa   :  { %v534_v38 = vpop.f32.mrb[1].mxu1 }
  0xfb   :  { %v535_v39 = vadd.f32 %v534_v38, %v533_v36  ;;  %v208_v40 = vadd.f32 %v497_v37, %v460_v34  ;;  %v498_v41 = vpop.f32.mrb[2].mxu0 }
  0xfc   :  { %v499_v42 = vpop.f32.mrb[3].mxu0 }
  0xfd   :  { %v536_v43 = vpop.f32.mrb[2].mxu1  ;;  %v283_v44 = vadd.f32 %v535_v39, %v208_v40  ;;  %v500_v45 = vadd.f32 %v499_v42, %v498_v41 }
  0xfe   :  { %v537_v46 = vpop.f32.mrb[3].mxu1 }
  0xff   :  { %v538_v47 = vadd.f32 %v537_v46, %v536_v43  ;;  %v213_v48 = vadd.f32 %v500_v45, %v460_v34 }
 0x101   :  { %v587_v49 = vpop.f32.mrb[4].mxu1  ;;  %v288_v50 = vadd.f32 %v538_v47, %v213_v48 }
 0x102   :  { %v432_v51 = vpop.f32.mrb[5].mxu1 }
 0x117   :  { %v571_v52 = vpop.f32.mrb[4].mxu0 }
 0x118   :  { %v572_v53 = vpop.f32.mrb[5].mxu0 }
 0x119   :  { %v573_v54 = vadd.f32 %v572_v53, %v571_v52 }
 0x11b   :  { %v574_v55 = vpop.f32.mrb[6].mxu0  ;;  %v358_v56 = vadd.f32 %v573_v54, %v283_v44 }
 0x11c   :  { %v575_v57 = vpop.f32.mrb[7].mxu0 }
 0x11d   :  { %v576_v58 = vadd.f32 %v575_v57, %v574_v55  ;;  %v433_v59 = vadd.f32 %v432_v51, %v358_v56 }
 0x11f   :  { %v363_v60 = vadd.f32 %v576_v58, %v288_v50  ;;  %442 = vst.msk [vmem:[#allocation2] sm:$0xff] %vm441_vm1, %v433_v59 }
 0x121   :  { %v438_v61 = vadd.f32 %v587_v49, %v363_v60 }
 0x123   :  { %443 = vst.msk [vmem:[#allocation2 + $0x8] sm:$0xff] %vm441_vm1, %v438_v61 }
 0x124   :  { %702 = shalt.err (!%p699_p4)
}
 0x125   :  { %s703_s24 = scalar_lea.hbm %s1092_s3, 256 }
 0x126   :  { %p704_p5 = scmp.ne.s32.totalorder %s1092_s3, %s703_s24  ;;  %p707_p6 = scmp.lt.u32.totalorder %s703_s24, %s1092_s3 }
 0x128   :  { %p709_p7 = pnand %p707_p6, %p704_p5 }
 0x12a   :  { %712 = shalt.err (!%p709_p7)
}
 0x12b   :  { %s716_s29 = smov 128   ;;  %s717_s30 = smov 8  }
 0x12c   :  { %455 = dma.vmem_to_hbm [thread:$0]  %s450_s2, 256, %s1092_s3, [#allocation3], %s716_s29, %s716_s29, %s717_s30  }
 0x12d   :  { %713 = dma.done.wait [#allocation3], 256  }
 0x12e   :  { %714 = vsyncadd [#allocation3], 4294967040 }
 0x12f   :  { %459 = vsyncpa [#allocation3], 1 }

</bundles_post_ra>
